<compile_context>
chip_gen: v7x
topology: tpu7x:2x2x1
jax: 0.10.0
libtpu: 0.0.40
codegen_flags: <defaults>
</compile_context>

<pallas_src>
import functools
import math

import jax
import jax.numpy as jnp
import numpy as np
from jax.experimental import pallas as pl
from jax.experimental.pallas import tpu as pltpu


def _round_up(x, m):
    return (x + m - 1) // m * m


_VMEM_TILE_BUDGET = 24 * 1024 * 1024   # per-step tile budget, safe on v7x too
_VMEM_LIMIT_BYTES = 48 * 1024 * 1024   # scoped VMEM limit (< v7x 64 MiB phys)


# -----------------------------------------------------------------------------
# Kernels
# -----------------------------------------------------------------------------
def _gated_epilogue(z, c_pad):
    # sigmoid(a) * sigmoid(g) = 1 / ((1 + e^-a) * (1 + e^-g)) : two EUP exps,
    # one VPU multiply-chain, one approx reciprocal (EUP), instead of two full
    # sigmoids (two exps + two divides).
    ea = jnp.exp(-z[:, :c_pad])
    eg = jnp.exp(-z[:, c_pad:])
    return pl.reciprocal((1.0 + ea) * (1.0 + eg), approx=True)


def gated_head_kernel_single_k(x_ref, w_ref, b_ref, o_ref):
    """One batch tile, whole contraction in a single MXU call.

    x_ref: [TB, F_pad] bf16   w_ref: [F_pad, 2*Cp] bf16 (VMEM-resident)
    b_ref: [1, 2*Cp] f32      o_ref: [TB, Cp] f32
    """
    z = jnp.dot(x_ref[...], w_ref[...], preferred_element_type=jnp.float32)
    z = z + b_ref[...]
    o_ref[...] = _gated_epilogue(z, o_ref.shape[-1]).astype(o_ref.dtype)


def gated_head_kernel_multi_k(x_ref, w_ref, b_ref, o_ref, acc_ref):
    """(batch tile, K tile) grid step with a resident f32 accumulator."""
    k = pl.program_id(1)

    @pl.when(k == 0)
    def _():
        # Fold the bias into the accumulator init (saves a VPU pass later).
        acc_ref[...] = jnp.broadcast_to(b_ref[...], acc_ref.shape)

    acc_ref[...] += jnp.dot(
        x_ref[...], w_ref[...], preferred_element_type=jnp.float32
    )

    @pl.when(k == pl.num_programs(1) - 1)
    def _():
        o_ref[...] = _gated_epilogue(
            acc_ref[...], o_ref.shape[-1]
        ).astype(o_ref.dtype)


# -----------------------------------------------------------------------------
# One-time parameter packing (keep OUTSIDE the per-call hot path)
# -----------------------------------------------------------------------------
def prepare_gated_head_params(weight, bias, n_cls, *,
                              compute_dtype=jnp.bfloat16, block_k=1024):
    """weight: [2*n_cls, F] (PyTorch nn.Linear layout), bias: [2*n_cls].

    Returns (w_fused [F_pad, 2*C_pad] compute_dtype, b_fused [1, 2*C_pad] f32,
    c_pad). C_pad is a multiple of 128 (lane-dense output); F_pad is a
    multiple of 128, and a multiple of block_k when F > block_k so the
    contraction tile always divides it exactly (no tiny-tk fallback).
    """
    two_c, f = weight.shape
    assert two_c == 2 * n_cls and bias.shape == (two_c,)
    c_pad = _round_up(n_cls, 128)
    f_pad = _round_up(f, 128)
    if f_pad > block_k:
        f_pad = _round_up(f, block_k)

    w = weight.astype(compute_dtype)
    w_fused = jnp.zeros((f_pad, 2 * c_pad), dtype=compute_dtype)
    w_fused = w_fused.at[:f, :n_cls].set(w[:n_cls, :].T)                # act
    w_fused = w_fused.at[:f, c_pad:c_pad + n_cls].set(w[n_cls:, :].T)   # gate

    b32 = bias.astype(jnp.float32)
    b_fused = jnp.zeros((1, 2 * c_pad), dtype=jnp.float32)
    b_fused = b_fused.at[0, :n_cls].set(b32[:n_cls])
    b_fused = b_fused.at[0, c_pad:c_pad + n_cls].set(b32[n_cls:])
    return w_fused, b_fused, c_pad


# -----------------------------------------------------------------------------
# Tiling
# -----------------------------------------------------------------------------
def _pick_tiles(b, f_pad, c_pad, in_itemsize, sublane, block_b, block_k):
    def footprint(tb, tk, with_acc):
        x_b = 2 * tb * tk * in_itemsize                  # double-buffered x
        w_b = 2 * tk * 2 * c_pad * in_itemsize           # weight (counted x2)
        o_b = 2 * tb * c_pad * 4                         # double-buffered out
        bias_b = 2 * 2 * c_pad * 4
        acc_b = tb * 2 * c_pad * 4 if with_acc else 0
        return x_b + w_b + o_b + bias_b + acc_b

    # Batch: pad only to the sublane multiple, then split into equal tiles
    # that exactly cover it (no oversized padding to the block size).
    b_min = _round_up(b, sublane)
    min_tiles = 2 if b_min >= 128 else 1                 # feed both v7x cores
    n_b = max(math.ceil(b_min / block_b), min_tiles)
    tb = _round_up(math.ceil(b_min / n_b), sublane)
    b_pad = n_b * tb

    # Prefer a single K tile: no accumulator, no pl.when, resident weight.
    if footprint(tb, f_pad, False) <= _VMEM_TILE_BUDGET:
        return tb, b_pad, f_pad

    tk = min(f_pad, block_k)
    while True:
        if footprint(tb, tk, True) <= _VMEM_TILE_BUDGET:
            return tb, b_pad, tk
        if tk > 256 and f_pad % (tk // 2) == 0:
            tk //= 2
        elif tb > 4 * sublane:
            n_b += 1
            tb = _round_up(math.ceil(b_min / n_b), sublane)
            b_pad = n_b * tb
        else:
            return tb, b_pad, tk    # best effort; vmem_limit gives headroom


# -----------------------------------------------------------------------------
# Wrapper
# -----------------------------------------------------------------------------
@functools.partial(
    jax.jit, static_argnames=("n_cls", "c_pad", "block_b", "block_k")
)
def gated_head(x, w_fused, b_fused, *, n_cls, c_pad, block_b=512, block_k=1024):
    """x: [B, F] -> sigmoid(act) * sigmoid(gate): [B, n_cls] float32."""
    b, f = x.shape
    f_pad, two_cp = w_fused.shape
    assert two_cp == 2 * c_pad and f_pad % 128 == 0 and f_pad >= f

    compute_dtype = w_fused.dtype
    in_itemsize = jnp.dtype(compute_dtype).itemsize
    sublane = 16 if in_itemsize == 2 else 8

    tb, b_pad, tk = _pick_tiles(
        b, f_pad, c_pad, in_itemsize, sublane, block_b, block_k
    )
    assert b_pad % tb == 0 and f_pad % tk == 0
    single_k = tk == f_pad

    # Cast activations to the bf16 compute dtype (halves HBM bytes); the MXU
    # still accumulates in f32 via preferred_element_type.
    x = x.astype(compute_dtype)
    if (b_pad, f_pad) != (b, f):
        x = jnp.pad(x, ((0, b_pad - b), (0, f_pad - f)))

    compiler_params = pltpu.CompilerParams(
        dimension_semantics=("parallel",) if single_k
        else ("parallel", "arbitrary"),
        vmem_limit_bytes=_VMEM_LIMIT_BYTES,
    )
    out_shape = jax.ShapeDtypeStruct((b_pad, c_pad), jnp.float32)

    if single_k:
        out = pl.pallas_call(
            gated_head_kernel_single_k,
            out_shape=out_shape,
            grid_spec=pltpu.PrefetchScalarGridSpec(
                num_scalar_prefetch=0,
                grid=(b_pad // tb,),
                in_specs=[
                    pl.BlockSpec((tb, f_pad), lambda i: (i, 0)),          # x
                    pl.BlockSpec((f_pad, 2 * c_pad), lambda i: (0, 0)),   # w (resident)
                    pl.BlockSpec((1, 2 * c_pad), lambda i: (0, 0)),       # bias
                ],
                out_specs=pl.BlockSpec((tb, c_pad), lambda i: (i, 0)),
            ),
            compiler_params=compiler_params,
        )(x, w_fused, b_fused)
    else:
        out = pl.pallas_call(
            gated_head_kernel_multi_k,
            out_shape=out_shape,
            grid_spec=pltpu.PrefetchScalarGridSpec(
                num_scalar_prefetch=0,
                grid=(b_pad // tb, f_pad // tk),
                in_specs=[
                    pl.BlockSpec((tb, tk), lambda i, k: (i, k)),          # x
                    pl.BlockSpec((tk, 2 * c_pad), lambda i, k: (k, 0)),   # w
                    pl.BlockSpec((1, 2 * c_pad), lambda i, k: (0, 0)),    # bias
                ],
                out_specs=pl.BlockSpec((tb, c_pad), lambda i, k: (i, 0)),
                scratch_shapes=[pltpu.VMEM((tb, 2 * c_pad), jnp.float32)],
            ),
            compiler_params=compiler_params,
        )(x, w_fused, b_fused)

    return out[:b, :n_cls]


def gated_head_ref(x, weight, bias, n_cls):
    z = x @ weight.T + bias
    return jax.nn.sigmoid(z[:, :n_cls]) * jax.nn.sigmoid(z[:, n_cls:])


if __name__ == "__main__":
    B, F, C = 8, 32, 16  # batch, in_feats, n_cls (small demo shapes)

    key = jax.random.PRNGKey(0)
    kx, kw, kb = jax.random.split(key, 3)

    # Deterministic params mimicking torch.nn.Linear init: U(-1/sqrt(F), 1/sqrt(F)).
    bound = 1.0 / np.sqrt(F)
    x = jax.random.normal(kx, (B, F), dtype=jnp.float32)
    weight = jax.random.uniform(kw, (2 * C, F), dtype=jnp.float32,
                                minval=-bound, maxval=bound)
    bias = jax.random.uniform(kb, (2 * C,), dtype=jnp.float32,
                              minval=-bound, maxval=bound)

    # One-time parameter packing (split + transpose + pad + bf16 cast).
    w_fused, b_fused, c_pad = prepare_gated_head_params(weight, bias, C)

    out = gated_head(x, w_fused, b_fused, n_cls=C, c_pad=c_pad)
    out = jax.block_until_ready(out)

    ref = gated_head_ref(x, weight, bias, C)
    # bf16 compute + approx reciprocal: expect ~1e-3..1e-2 deviation vs f32 ref.
    np.testing.assert_allclose(np.asarray(out), np.asarray(ref),
                               rtol=2e-2, atol=2e-2)

    print("KERNEL_OK")
</pallas_src>

<mosaic_0001>
module attributes {stable_mosaic.version = 11 : i64} {
  func.func @gated_head_kernel_single_k(%arg0: i32, %arg1: memref<16x128xbf16, #tpu.memory_space<vmem>>, %arg2: memref<128x256xbf16, #tpu.memory_space<vmem>>, %arg3: memref<1x256xf32, #tpu.memory_space<vmem>>, %arg4: memref<16x128xf32, #tpu.memory_space<vmem>>) attributes {dimension_semantics = [#tpu.dimension_semantics<parallel>], iteration_bounds = array<i64: 1>, scalar_prefetch = 0 : i64, scratch_operands = 0 : i64, tpu.core_type = #tpu.core_type<tc>, window_params = [{transform_indices = @transform_0, window_bounds = array<i64: 16, 128>}, {pipeline_mode = #tpu.pipeline_mode<synchronous>, transform_indices = @transform_1, window_bounds = array<i64: 128, 256>}, {pipeline_mode = #tpu.pipeline_mode<synchronous>, transform_indices = @transform_2, window_bounds = array<i64: 1, 256>}, {transform_indices = @transform_3, window_bounds = array<i64: 16, 128>}]} {
    %c0 = arith.constant 0 : index
    %c0_0 = arith.constant 0 : index
    %0 = vector.load %arg1[%c0, %c0_0] : memref<16x128xbf16, #tpu.memory_space<vmem>>, vector<16x128xbf16>
    %c0_1 = arith.constant 0 : index
    %c0_2 = arith.constant 0 : index
    %1 = vector.load %arg2[%c0_1, %c0_2] : memref<128x256xbf16, #tpu.memory_space<vmem>>, vector<128x256xbf16>
    %cst = arith.constant dense<0.000000e+00> : vector<16x256xf32>
    %2 = tpu.matmul %0, %1, %cst {dimension_numbers = #tpu.dot_dimension_numbers<[1], [0], [0], [1], [0, 0, 1, 1], [], []>} : vector<16x128xbf16>, vector<128x256xbf16>, vector<16x256xf32> -> vector<16x256xf32>
    %c0_3 = arith.constant 0 : index
    %c0_4 = arith.constant 0 : index
    %3 = vector.load %arg3[%c0_3, %c0_4] : memref<1x256xf32, #tpu.memory_space<vmem>>, vector<1x256xf32>
    %4 = vector.broadcast %3 : vector<1x256xf32> to vector<16x256xf32>
    %5 = arith.addf %2, %4 : vector<16x256xf32>
    %6 = vector.extract_strided_slice %5 {offsets = [0, 0], sizes = [16, 128], strides = [1, 1]} : vector<16x256xf32> to vector<16x128xf32>
    %cst_5 = arith.constant 0.000000e+00 : f32
    %7 = vector.broadcast %cst_5 : f32 to vector<16x128xf32>
    %8 = arith.subf %7, %6 : vector<16x128xf32>
    %9 = math.exp %8 : vector<16x128xf32>
    %10 = vector.extract_strided_slice %5 {offsets = [0, 128], sizes = [16, 128], strides = [1, 1]} : vector<16x256xf32> to vector<16x128xf32>
    %cst_6 = arith.constant 0.000000e+00 : f32
    %11 = vector.broadcast %cst_6 : f32 to vector<16x128xf32>
    %12 = arith.subf %11, %10 : vector<16x128xf32>
    %13 = math.exp %12 : vector<16x128xf32>
    %cst_7 = arith.constant 1.000000e+00 : f32
    %14 = vector.broadcast %cst_7 : f32 to vector<16x128xf32>
    %15 = arith.addf %14, %9 : vector<16x128xf32>
    %cst_8 = arith.constant 1.000000e+00 : f32
    %16 = vector.broadcast %cst_8 : f32 to vector<16x128xf32>
    %17 = arith.addf %16, %13 : vector<16x128xf32>
    %18 = arith.mulf %15, %17 : vector<16x128xf32>
    %19 = tpu.reciprocal %18 {approx = true} : vector<16x128xf32> -> vector<16x128xf32>
    %c0_9 = arith.constant 0 : index
    %c0_10 = arith.constant 0 : index
    %20 = vector.load %arg4[%c0_9, %c0_10] : memref<16x128xf32, #tpu.memory_space<vmem>>, vector<16x128xf32>
    tpu.vector_store %arg4[%c0_9, %c0_10], %19 {strides = array<i32>} : memref<16x128xf32, #tpu.memory_space<vmem>>, vector<16x128xf32>,
    return
  }
  func.func @transform_0(%arg0: i32) -> (i32, i32) {
    %c0_i32 = arith.constant 0 : i32
    %c0_i32_0 = arith.constant 0 : i32
    return %arg0, %c0_i32 : i32, i32
  }
  func.func @transform_1(%arg0: i32) -> (i32, i32) {
    %c0_i32 = arith.constant 0 : i32
    %c0_i32_0 = arith.constant 0 : i32
    %c0_i32_1 = arith.constant 0 : i32
    return %c0_i32, %c0_i32_0 : i32, i32
  }
  func.func @transform_2(%arg0: i32) -> (i32, i32) {
    %c0_i32 = arith.constant 0 : i32
    %c0_i32_0 = arith.constant 0 : i32
    %c0_i32_1 = arith.constant 0 : i32
    return %c0_i32, %c0_i32_0 : i32, i32
  }
  func.func @transform_3(%arg0: i32) -> (i32, i32) {
    %c0_i32 = arith.constant 0 : i32
    %c0_i32_0 = arith.constant 0 : i32
    return %arg0, %c0_i32 : i32, i32
  }
}

</mosaic_0001>

<bundles_post_ra>
// kernel: gated_head.1
= control target key start
LH: loop header
LB: loop body
LE: loop exit
PB: predicated region body
PF: predicated region fallthrough
CT: control target
= control target key end

     0   :  { %8 = vsyncpa [#allocation3], 0  ;;  %s297_s12 = smov [#allocation2]   ;;  %s345_s0 = inlined_call_operand.vmem [shape: bf16[16,128], index: 0, kind: input, shape index: {}]   ;;  %s346_s1 = inlined_call_operand.hbm [shape: bf16[128,256], index: 1, kind: input, shape index: {}]   ;;  %s347_s2 = inlined_call_operand.vmem [shape: f32[1,256], index: 2, kind: input, shape index: {}]   ;;  %s348_s3 = inlined_call_operand.vmem [shape: f32[16,128], index: 3, kind: output, shape index: {}]  }
   0x1   :  { %s16_s13 = sshll.u32 %s297_s12, 4  ;;  %s273_s16 = scalar_lea.hbm %s346_s1, 2048  ;;  %s17_s13 = int_to_ptr.vmem [resolvable:$true] %s16_s13 }
   0x2   :  { %p274_p0 = scmp.ne.s32.totalorder %s346_s1, %s273_s16  ;;  %p277_p1 = scmp.lt.u32.totalorder %s273_s16, %s346_s1 }
   0x4   :  { %p279_p2 = pnand %p277_p1, %p274_p0 }
   0x6   :  { %282 = shalt.err (!%p279_p2)
}
   0x7   :  { %s283_s21 = scalar_lea.vmem %s17_s13, 2048  ;;  %p288_p4 = scmp.lt.s32.totalorder %s17_s13, %s17_s13 }
   0x8   :  { %p284_p3 = scmp.ne.s32.totalorder %s17_s13, %s283_s21  ;;  %p289_p5 = scmp.lt.s32.totalorder %s283_s21, %s283_s21 }
   0xa   :  { %p290_p6 = por %p289_p5, %p288_p4 }
   0xc   :  { %p291_p7 = pnand %p290_p6, %p284_p3 }
   0xe   :  { %294 = shalt.err (!%p291_p7)
}
   0xf   :  { %s298_s22 = smov 128   ;;  %s299_s23 = smov 8  }
  0x10   :  { %22 = dma.hbm_to_vmem [thread:$0]  %s346_s1, 2048, %s17_s13, [#allocation3], %s298_s22, %s298_s22, %s299_s23  }
  0x11   :  { %295 = dma.done.wait [#allocation3], 2048  }
  0x12   :  { %296 = vsyncadd [#allocation3], 4294965248  ;;  %v300_v0 = vmov 0   ;;  %v236_v1 = vld [vmem:[#allocation2 + $0x4] ss:$8 sps:$4 sm:$0xff]   ;;  %v49_v18 = vlaneseq }
  0x13   :  { %177 = vmatprep.mubr.bf16.mxu0 %v300_v0  ;;  %v238_v2 = vld [vmem:[#allocation2] ss:$8 sps:$4 sm:$0xff]   ;;  %145 = vmatprep.subr.bf16.mxu0 %v236_v1  ;;  %v239_v3 = vld [vmem:[#allocation2 + $0x14] ss:$8 sps:$4 sm:$0xff]   ;;  %v241_v4 = vld [vmem:[#allocation2 + $0x10] ss:$8 sps:$4 sm:$0xff]  }
  0x14   :  { %146 = vmatpush1.bf16.msra.mxu0 %v238_v2  ;;  %v242_v5 = vld [vmem:[#allocation2 + $0x24] ss:$8 sps:$4 sm:$0xff]   ;;  %v244_v6 = vld [vmem:[#allocation2 + $0x20] ss:$8 sps:$4 sm:$0xff]   ;;  %v245_v7 = vld [vmem:[#allocation2 + $0x34] ss:$8 sps:$4 sm:$0xff]  }
  0x15   :  { %147 = vmatprep.subr.bf16.mxu0 %v239_v3  ;;  %v247_v8 = vld [vmem:[#allocation2 + $0x30] ss:$8 sps:$4 sm:$0xff]   ;;  %v248_v9 = vld [vmem:[#allocation2 + $0x44] ss:$8 sps:$4 sm:$0xff]   ;;  %v250_v10 = vld [vmem:[#allocation2 + $0x40] ss:$8 sps:$4 sm:$0xff]  }
  0x16   :  { %v251_v11 = vld [vmem:[#allocation2 + $0x54] ss:$8 sps:$4 sm:$0xff]   ;;  %v253_v12 = vld [vmem:[#allocation2 + $0x50] ss:$8 sps:$4 sm:$0xff]   ;;  %v254_v13 = vld [vmem:[#allocation2 + $0x64] ss:$8 sps:$4 sm:$0xff]  }
  0x17   :  { %v256_v14 = vld [vmem:[#allocation2 + $0x60] ss:$8 sps:$4 sm:$0xff]   ;;  %v257_v15 = vld [vmem:[#allocation2 + $0x74] ss:$8 sps:$4 sm:$0xff]   ;;  %v259_v16 = vld [vmem:[#allocation2 + $0x70] ss:$8 sps:$4 sm:$0xff]  }
  0x18   :  { %148 = vmatpush1.bf16.msra.mxu0 %v241_v4  ;;  %v260_v17 = vld [vmem:[%s345_s0] sm:$0xff]   ;;  %v50_v19 = vshrl.u32 %v49_v18, 7 }
  0x19   :  { %149 = vmatprep.subr.bf16.mxu0 %v242_v5  ;;  %v47_v21 = vld [vmem:[%s347_s2] sm:$0x3] }
  0x1a   :  { %v51_v20 = vsub.s32 0, %v50_v19  ;;  %v55_v22 = vsub.s32 1, %v50_v19 }
  0x1c   :  { %150 = vmatpush1.bf16.msra.mxu0 %v244_v6  ;;  %v52_v23 = vrot.slane %v47_v21, %v51_v20  ;;  %v56_v24 = vrot.slane %v47_v21, %v55_v22 }
  0x1d   :  { %151 = vmatprep.subr.bf16.mxu0 %v245_v7 }
  0x20   :  { %152 = vmatpush1.bf16.msra.mxu0 %v247_v8 }
  0x21   :  { %153 = vmatprep.subr.bf16.mxu0 %v248_v9 }
  0x24   :  { %154 = vmatpush1.bf16.msra.mxu0 %v250_v10 }
  0x25   :  { %155 = vmatprep.subr.bf16.mxu0 %v251_v11 }
  0x28   :  { %156 = vmatpush1.bf16.msra.mxu0 %v253_v12 }
  0x29   :  { %157 = vmatprep.subr.bf16.mxu0 %v254_v13 }
  0x2c   :  { %158 = vmatpush1.bf16.msra.mxu0 %v256_v14 }
  0x2d   :  { %159 = vmatprep.subr.bf16.mxu0 %v257_v15 }
  0x30   :  { %160 = vmatpush1.bf16.msra.mxu0 %v259_v16 }
  0x33   :  { %178 = vmatmul.mubr.bf16.vlgmr.msra.gmra.mrb[0].mxu0 %v260_v17 }
 0x106   :  { %v179_v25 = vpop.f32.mrb[0].mxu0 }
 0x107   :  { %v180_v26 = vadd.f32 %v179_v25, %v52_v23  ;;  %v181_v27 = vpop.f32.mrb[1].mxu0 }
 0x108   :  { %v182_v28 = vadd.f32 %v181_v27, %v56_v24  ;;  %v183_v29 = vpop.f32.mrb[2].mxu0 }
 0x109   :  { %v188_v30 = vsub.f32 0.0, %v180_v26  ;;  %v184_v31 = vadd.f32 %v183_v29, %v52_v23  ;;  %v185_v32 = vpop.f32.mrb[3].mxu0 }
 0x10a   :  { %v194_v33 = vsub.f32 0.0, %v182_v28  ;;  %v186_v34 = vadd.f32 %v185_v32, %v56_v24 }
 0x10b   :  { %v190_v35 = vmul.f32 1.442695, %v188_v30  ;;  %v189_v36 = vsub.f32 0.0, %v184_v31 }
 0x10c   :  { %v196_v37 = vmul.f32 1.442695, %v194_v33  ;;  %v195_v38 = vsub.f32 0.0, %v186_v34 }
 0x10d   :  { %261 = vpow2.f32 %v190_v35  ;;  %v192_v39 = vmul.f32 1.442695, %v189_v36 }
 0x10e   :  { %263 = vpow2.f32 %v196_v37  ;;  %v198_v40 = vmul.f32 1.442695, %v195_v38 }
 0x10f   :  { %265 = vpow2.f32 %v192_v39 }
 0x110   :  { %267 = vpow2.f32 %v198_v40 }
 0x117   :  { %v262_v41 = vpop.eup %261 }
 0x118   :  { %v264_v42 = vpop.eup %263  ;;  %v200_v43 = vadd.f32 1.0, %v262_v41 }
 0x119   :  { %v266_v44 = vpop.eup %265  ;;  %v202_v45 = vadd.f32 1.0, %v264_v42 }
 0x11a   :  { %v268_v46 = vpop.eup %267  ;;  %v201_v47 = vadd.f32 1.0, %v266_v44 }
 0x11b   :  { %v204_v48 = vmul.f32 %v202_v45, %v200_v43  ;;  %v203_v49 = vadd.f32 1.0, %v268_v46 }
 0x11d   :  { %269 = vrcp.f32 %v204_v48  ;;  %v205_v50 = vmul.f32 %v203_v49, %v201_v47 }
 0x11f   :  { %271 = vrcp.f32 %v205_v50 }
 0x127   :  { %v270_v51 = vpop.eup %269 }
 0x128   :  { %208 = vst [vmem:[%s348_s3] sm:$0xff] %v270_v51 }
 0x129   :  { %v272_v52 = vpop.eup %271 }
 0x12a   :  { %209 = vst [vmem:[%s348_s3 + $0x8] sm:$0xff] %v272_v52 }
 0x12b   :  { %214 = vsyncpa [#allocation3], 1 }

</bundles_post_ra>
